<compile_context>
chip_gen: v7x
topology: tpu7x:2x2x1
jax: 0.10.0
libtpu: 0.0.40
codegen_flags: <defaults>
</compile_context>

<pallas_src>
import functools

import numpy as np
import jax
import jax.numpy as jnp
from jax.experimental import pallas as pl
from jax.experimental.pallas import tpu as pltpu

ENC_DIM = 64          # encoder_embedding_size
LATENT = 8            # latent_embedding_size
DEC_DIM = 64          # decoder_size / decoder_hidden_neurons
BN_EPS = 1e-5

# Row layout of the packed (16, 64) vector-parameter table.
_ROW_B1, _ROW_G1, _ROW_BE1 = 0, 1, 2
_ROW_B2, _ROW_G2, _ROW_BE2 = 3, 4, 5
_ROW_B3, _ROW_G3, _ROW_BE3 = 6, 7, 8
_ROW_BD3, _ROW_GD, _ROW_BED = 9, 10, 11
_ROW_W4 = 12            # decoder_dense_4 weight (64,1) stored as a row
_ROW_BLAT = 13          # [bmu(8) | blogvar(8) | zeros]
_ROW_BD4 = 14           # decoder_dense_4 bias at column 0
_N_VP_ROWS = 16


def _vmem_spec():
    return pl.BlockSpec(memory_space=pltpu.MemorySpace.VMEM)


# ------------------------------ fused kernel -------------------------------- #

def gvae_fused_kernel(a_ref, x_ref, w1_ref, w2_ref, w3_ref, wlat_ref, wd3_ref,
                      sel_ref, eps_ref, vp_ref, enc_ref, logit_ref):
    """Whole GVAE forward; everything stays on-chip between layers."""
    a = a_ref[...]
    vp = vp_ref[...]

    def batchnorm(h, gamma, beta):
        # Training-mode BN with biased variance; folded into one FMA/element.
        mean = jnp.mean(h, axis=0, keepdims=True)
        var = jnp.mean(h * h, axis=0, keepdims=True) - mean * mean  # one-pass
        scale = gamma * jax.lax.rsqrt(var + BN_EPS)
        shift = beta - mean * scale
        return h * scale + shift

    def gcn_relu_bn(h_in, w, bias, gamma, beta):
        xw = jnp.dot(h_in, w, preferred_element_type=jnp.float32)
        h = jnp.dot(a, xw, preferred_element_type=jnp.float32) + bias
        h = jnp.maximum(h, 0.0)
        return batchnorm(h, gamma, beta)

    # ----- encoder: 3 x (GCNConv -> ReLU -> BatchNorm, training stats) -----
    h = gcn_relu_bn(x_ref[...], w1_ref[...], vp[_ROW_B1:_ROW_B1 + 1],
                    vp[_ROW_G1:_ROW_G1 + 1], vp[_ROW_BE1:_ROW_BE1 + 1])
    h = gcn_relu_bn(h, w2_ref[...], vp[_ROW_B2:_ROW_B2 + 1],
                    vp[_ROW_G2:_ROW_G2 + 1], vp[_ROW_BE2:_ROW_BE2 + 1])
    h = gcn_relu_bn(h, w3_ref[...], vp[_ROW_B3:_ROW_B3 + 1],
                    vp[_ROW_G3:_ROW_G3 + 1], vp[_ROW_BE3:_ROW_BE3 + 1])

    # ----- latent heads: one (64 -> 2L) matmul, packed [mu | logvar] output ---
    b_lat = vp[_ROW_BLAT:_ROW_BLAT + 1, :2 * LATENT]
    mulv = jnp.dot(h, wlat_ref[...], preferred_element_type=jnp.float32) + b_lat
    enc_ref[...] = mulv                                  # (N, 2L) packed output
    mu = mulv[:, :LATENT]
    logvar = mulv[:, LATENT:]

    # reparameterize exactly as the reference (training): std = exp(logvar)
    z = eps_ref[...] * jnp.exp(logvar) + mu              # (N, L)

    # ----- decoder dense_3 fused with pair gather -----
    # pair_inputs @ W3  =  [z[src] | z[tgt]] @ [W3_top; W3_bot]
    #                   =  S @ (z @ W3_top) + T @ (z @ W3_bot)
    #                   =  sel @ concat([z @ W3_top, z @ W3_bot], axis=0)
    wd3 = wd3_ref[...]                                   # (2L, DEC_DIM)
    zs = jnp.dot(z, wd3[:LATENT, :], preferred_element_type=jnp.float32)
    zt = jnp.dot(z, wd3[LATENT:, :], preferred_element_type=jnp.float32)
    zst = jnp.concatenate([zs, zt], axis=0)              # (2N, DEC_DIM)
    hd = jnp.dot(sel_ref[...], zst, preferred_element_type=jnp.float32)
    hd = jnp.maximum(hd + vp[_ROW_BD3:_ROW_BD3 + 1], 0.0)
    hd = batchnorm(hd, vp[_ROW_GD:_ROW_GD + 1], vp[_ROW_BED:_ROW_BED + 1])

    # ----- decoder dense_4 (64 -> 1): VPU multiply + lane reduce (no MXU) -----
    w4_row = vp[_ROW_W4:_ROW_W4 + 1]                     # (1, DEC_DIM)
    bd4 = vp[_ROW_BD4:_ROW_BD4 + 1, 0:1]                 # (1, 1)
    logit_ref[...] = jnp.sum(hd * w4_row, axis=-1, keepdims=True) + bd4


# ------------------------------ host-side glue ------------------------------- #

def build_norm_adj(edge_index, num_nodes):
    """Dense GCN normalization: D^{-1/2} (A + I) D^{-1/2}, A[dst, src] = 1."""
    src, dst = edge_index[0], edge_index[1]
    a = jnp.zeros((num_nodes, num_nodes), jnp.float32).at[dst, src].add(1.0)
    a = a + jnp.eye(num_nodes, dtype=jnp.float32)
    deg = jnp.sum(a, axis=1)
    d_inv_sqrt = jnp.where(deg > 0, 1.0 / jnp.sqrt(deg), 0.0)
    return a * d_inv_sqrt[:, None] * d_inv_sqrt[None, :]


def build_pair_selector(nodes_per_graph, num_graphs):
    """Static one-hot [S | T] selector of shape (num_pairs, 2*N_nodes).

    Pair ordering matches the reference decode(): per graph (in batch order),
    row-major upper-triangular (offset=1) source/target pairs.
    """
    # TODO(synk): assumes batch_index marks contiguous, equal-size graphs
    # (dynamic per-graph node counts have no static-shape Pallas equivalent).
    n_nodes = nodes_per_graph * num_graphs
    src_i, tgt_i = np.triu_indices(nodes_per_graph, k=1)
    p_per_g = src_i.shape[0]
    sel = np.zeros((num_graphs * p_per_g, 2 * n_nodes), np.float32)
    for g in range(num_graphs):
        off = g * nodes_per_graph
        rows = np.arange(p_per_g) + g * p_per_g
        sel[rows, off + src_i] = 1.0
        sel[rows, n_nodes + off + tgt_i] = 1.0
    return jnp.asarray(sel)


def pack_vec_params(p):
    """Pack all bias / BN / tiny weights into one (16, 64) f32 table."""
    rows = [
        p["b1"], p["bn1_g"], p["bn1_b"],
        p["b2"], p["bn2_g"], p["bn2_b"],
        p["b3"], p["bn3_g"], p["bn3_b"],
        p["bd3"], p["dbn_g"], p["dbn_b"],
        p["wd4"].reshape(1, DEC_DIM),
        jnp.concatenate([p["bmu"], p["blv"]], axis=1),
        p["bd4"],
        jnp.zeros((1, ENC_DIM), jnp.float32),
    ]
    rows = [jnp.pad(r, ((0, 0), (0, ENC_DIM - r.shape[1]))) for r in rows]
    return jnp.concatenate(rows, axis=0)


@functools.partial(jax.jit, static_argnames=("nodes_per_graph", "num_graphs"))
def gvae_forward(params, x, edge_attr, edge_index, batch_index, eps,
                 nodes_per_graph, num_graphs):
    # NOTE: edge_attr is accepted but unused, exactly as in the PyTorch forward.
    # batch_index is unused because the static selector already encodes the
    # (contiguous, equal-size) batch structure.
    del edge_attr, batch_index
    n = x.shape[0]
    a_norm = build_norm_adj(edge_index, n)
    sel = build_pair_selector(nodes_per_graph, num_graphs)
    vp = pack_vec_params(params)
    wlat = jnp.concatenate([params["wmu"], params["wlv"]], axis=1)  # (64, 2L)
    n_pairs = sel.shape[0]

    enc, triu_logits = pl.pallas_call(
        gvae_fused_kernel,
        out_shape=(jax.ShapeDtypeStruct((n, 2 * LATENT), jnp.float32),
                   jax.ShapeDtypeStruct((n_pairs, 1), jnp.float32)),
        in_specs=[_vmem_spec() for _ in range(10)],
        out_specs=(_vmem_spec(), _vmem_spec()),
    )(a_norm, x, params["w1"], params["w2"], params["w3"], wlat, params["wd3"],
      sel, eps, vp)

    mu = enc[:, :LATENT]
    logvar = enc[:, LATENT:]
    return triu_logits, mu, logvar


# -------------------------- pure-JAX reference ------------------------------- #

def gvae_reference(params, x, edge_index, eps, nodes_per_graph, num_graphs):
    """Straightforward (un-fused) forward, mirrors the PyTorch module."""
    a = build_norm_adj(edge_index, x.shape[0])

    def bn(h, g, b):
        mean = jnp.mean(h, axis=0, keepdims=True)
        var = jnp.mean((h - mean) ** 2, axis=0, keepdims=True)
        return (h - mean) / jnp.sqrt(var + BN_EPS) * g + b

    def gcn(h, w, bias):
        return jnp.maximum(a @ (h @ w) + bias, 0.0)

    h = bn(gcn(x, params["w1"], params["b1"]), params["bn1_g"], params["bn1_b"])
    h = bn(gcn(h, params["w2"], params["b2"]), params["bn2_g"], params["bn2_b"])
    h = bn(gcn(h, params["w3"], params["b3"]), params["bn3_g"], params["bn3_b"])
    mu = h @ params["wmu"] + params["bmu"]
    logvar = h @ params["wlv"] + params["blv"]
    z = eps * jnp.exp(logvar) + mu

    src_i, tgt_i = np.triu_indices(nodes_per_graph, k=1)
    pairs = []
    for g in range(num_graphs):
        zg = z[g * nodes_per_graph:(g + 1) * nodes_per_graph]
        pairs.append(jnp.concatenate([zg[src_i], zg[tgt_i]], axis=1))
    inputs = jnp.concatenate(pairs, axis=0)
    hd = jnp.maximum(inputs @ params["wd3"] + params["bd3"], 0.0)
    hd = bn(hd, params["dbn_g"], params["dbn_b"])
    logits = hd @ params["wd4"] + params["bd4"]
    return logits, mu, logvar


def init_params(feature_size, key):
    keys = jax.random.split(key, 8)

    def lin(k, fan_in, fan_out):
        return 0.1 * jax.random.normal(k, (fan_in, fan_out), jnp.float32)

    p = {}
    p["w1"] = lin(keys[0], feature_size, ENC_DIM); p["b1"] = jnp.zeros((1, ENC_DIM), jnp.float32)
    p["w2"] = lin(keys[1], ENC_DIM, ENC_DIM);      p["b2"] = jnp.zeros((1, ENC_DIM), jnp.float32)
    p["w3"] = lin(keys[2], ENC_DIM, ENC_DIM);      p["b3"] = jnp.zeros((1, ENC_DIM), jnp.float32)
    for i in (1, 2, 3):
        p[f"bn{i}_g"] = jnp.ones((1, ENC_DIM), jnp.float32)
        p[f"bn{i}_b"] = jnp.zeros((1, ENC_DIM), jnp.float32)
    p["wmu"] = lin(keys[3], ENC_DIM, LATENT); p["bmu"] = jnp.zeros((1, LATENT), jnp.float32)
    p["wlv"] = lin(keys[4], ENC_DIM, LATENT); p["blv"] = jnp.zeros((1, LATENT), jnp.float32)
    p["wd3"] = lin(keys[5], 2 * LATENT, DEC_DIM); p["bd3"] = jnp.zeros((1, DEC_DIM), jnp.float32)
    p["dbn_g"] = jnp.ones((1, DEC_DIM), jnp.float32)
    p["dbn_b"] = jnp.zeros((1, DEC_DIM), jnp.float32)
    p["wd4"] = lin(keys[6], DEC_DIM, 1); p["bd4"] = jnp.zeros((1, 1), jnp.float32)
    return p


# ------------------------------ main ---------------------------------------- #

if __name__ == "__main__":
    feature_size = 16
    edge_size = 4
    nodes_per_graph = 8
    num_graphs = 2
    n_nodes = nodes_per_graph * num_graphs

    key = jax.random.PRNGKey(0)
    kx, keps, kattr, kparams = jax.random.split(key, 4)

    x = jax.random.normal(kx, (n_nodes, feature_size), jnp.float32)

    # ring graph inside each component, both directions
    edges = []
    for g in range(num_graphs):
        off = g * nodes_per_graph
        for i in range(nodes_per_graph):
            j = (i + 1) % nodes_per_graph
            edges.append((off + i, off + j))
            edges.append((off + j, off + i))
    edge_index = jnp.asarray(edges, dtype=jnp.int32).T          # [2, E]
    edge_attr = jax.random.normal(kattr, (edge_index.shape[1], edge_size), jnp.float32)
    batch_index = jnp.repeat(jnp.arange(num_graphs, dtype=jnp.int32), nodes_per_graph)

    eps = jax.random.normal(keps, (n_nodes, LATENT), jnp.float32)  # reparam noise
    params = init_params(feature_size, kparams)

    triu_logits, mu, logvar = gvae_forward(
        params, x, edge_attr, edge_index, batch_index, eps,
        nodes_per_graph=nodes_per_graph, num_graphs=num_graphs)
    jax.block_until_ready((triu_logits, mu, logvar))

    # Shape / finiteness checks.
    n_pairs = num_graphs * (nodes_per_graph * (nodes_per_graph - 1) // 2)
    assert triu_logits.shape == (n_pairs, 1)
    assert mu.shape == (n_nodes, LATENT) and logvar.shape == (n_nodes, LATENT)
    assert bool(jnp.all(jnp.isfinite(triu_logits)))

    # Numerics check against a pure-JAX reference of the module forward.
    ref_logits, ref_mu, ref_logvar = gvae_reference(
        params, x, edge_index, eps, nodes_per_graph, num_graphs)
    np.testing.assert_allclose(np.asarray(mu), np.asarray(ref_mu),
                               rtol=2e-3, atol=2e-3)
    np.testing.assert_allclose(np.asarray(logvar), np.asarray(ref_logvar),
                               rtol=2e-3, atol=2e-3)
    np.testing.assert_allclose(np.asarray(triu_logits), np.asarray(ref_logits),
                               rtol=2e-3, atol=2e-3)

    print("KERNEL_OK")
</pallas_src>

<mosaic_0001>
module attributes {stable_mosaic.version = 11 : i64} {
  func.func private @main(%arg0: i32) attributes {dimension_semantics = [#tpu.dimension_semantics<core_parallel>], iteration_bounds = array<i64: 2>, tpu.core_type = #tpu.core_type<sc_scalar_subcore>, window_params = []} {
    return
  }
}

module attributes {stable_mosaic.version = 11 : i64} {
  func.func private @main(%arg0: i32) attributes {dimension_semantics = [#tpu.dimension_semantics<core_parallel>], iteration_bounds = array<i64: 2>, tpu.core_type = #tpu.core_type<sc_scalar_subcore>, window_params = []} {
    return
  }
}

module attributes {stable_mosaic.version = 11 : i64} {
  func.func @gvae_fused_kernel(%arg0: memref<16x16xf32, #tpu.memory_space<vmem>>, %arg1: memref<16x16xf32, #tpu.memory_space<vmem>>, %arg2: memref<16x64xf32, #tpu.memory_space<vmem>>, %arg3: memref<64x64xf32, #tpu.memory_space<vmem>>, %arg4: memref<64x64xf32, #tpu.memory_space<vmem>>, %arg5: memref<64x16xf32, #tpu.memory_space<vmem>>, %arg6: memref<16x64xf32, #tpu.memory_space<vmem>>, %arg7: memref<56x32xf32, #tpu.memory_space<vmem>>, %arg8: memref<16x8xf32, #tpu.memory_space<vmem>>, %arg9: memref<16x64xf32, #tpu.memory_space<vmem>>, %arg10: memref<16x16xf32, #tpu.memory_space<vmem>>, %arg11: memref<56x1xf32, #tpu.memory_space<vmem>>) attributes {dimension_semantics = [], scalar_prefetch = 0 : i64, scratch_operands = 0 : i64, tpu.core_type = #tpu.core_type<tc>} {
    %c0 = arith.constant 0 : index
    %c0_0 = arith.constant 0 : index
    %0 = vector.load %arg0[%c0, %c0_0] : memref<16x16xf32, #tpu.memory_space<vmem>>, vector<16x16xf32>
    %c0_1 = arith.constant 0 : index
    %c0_2 = arith.constant 0 : index
    %1 = vector.load %arg9[%c0_1, %c0_2] : memref<16x64xf32, #tpu.memory_space<vmem>>, vector<16x64xf32>
    %c0_3 = arith.constant 0 : index
    %c0_4 = arith.constant 0 : index
    %2 = vector.load %arg1[%c0_3, %c0_4] : memref<16x16xf32, #tpu.memory_space<vmem>>, vector<16x16xf32>
    %c0_5 = arith.constant 0 : index
    %c0_6 = arith.constant 0 : index
    %3 = vector.load %arg2[%c0_5, %c0_6] : memref<16x64xf32, #tpu.memory_space<vmem>>, vector<16x64xf32>
    %4 = vector.extract_strided_slice %1 {offsets = [0, 0], sizes = [1, 64], strides = [1, 1]} : vector<16x64xf32> to vector<1x64xf32>
    %5 = vector.extract_strided_slice %1 {offsets = [1, 0], sizes = [1, 64], strides = [1, 1]} : vector<16x64xf32> to vector<1x64xf32>
    %6 = vector.extract_strided_slice %1 {offsets = [2, 0], sizes = [1, 64], strides = [1, 1]} : vector<16x64xf32> to vector<1x64xf32>
    %cst = arith.constant dense<0.000000e+00> : vector<16x64xf32>
    %7 = tpu.matmul %2, %3, %cst {dimension_numbers = #tpu.dot_dimension_numbers<[1], [0], [0], [1], [0, 0, 1, 1], [], []>} : vector<16x16xf32>, vector<16x64xf32>, vector<16x64xf32> -> vector<16x64xf32>
    %cst_7 = arith.constant dense<0.000000e+00> : vector<16x64xf32>
    %8 = tpu.matmul %0, %7, %cst_7 {dimension_numbers = #tpu.dot_dimension_numbers<[1], [0], [0], [1], [0, 0, 1, 1], [], []>} : vector<16x16xf32>, vector<16x64xf32>, vector<16x64xf32> -> vector<16x64xf32>
    %9 = vector.broadcast %4 : vector<1x64xf32> to vector<16x64xf32>
    %10 = arith.addf %8, %9 : vector<16x64xf32>
    %cst_8 = arith.constant 0.000000e+00 : f32
    %11 = vector.broadcast %cst_8 : f32 to vector<16x64xf32>
    %12 = arith.maximumf %10, %11 : vector<16x64xf32>
    %cst_9 = arith.constant dense<0.000000e+00> : vector<64xf32>
    %13 = vector.multi_reduction <add>, %12, %cst_9 [0] : vector<16x64xf32> to vector<64xf32>
    %14 = vector.shape_cast %13 : vector<64xf32> to vector<1x64xf32>
    %cst_10 = arith.constant 1.600000e+01 : f32
    %15 = vector.broadcast %cst_10 : f32 to vector<1x64xf32>
    %16 = arith.divf %14, %15 : vector<1x64xf32>
    %17 = arith.mulf %12, %12 : vector<16x64xf32>
    %cst_11 = arith.constant dense<0.000000e+00> : vector<64xf32>
    %18 = vector.multi_reduction <add>, %17, %cst_11 [0] : vector<16x64xf32> to vector<64xf32>
    %19 = vector.shape_cast %18 : vector<64xf32> to vector<1x64xf32>
    %cst_12 = arith.constant 1.600000e+01 : f32
    %20 = vector.broadcast %cst_12 : f32 to vector<1x64xf32>
    %21 = arith.divf %19, %20 : vector<1x64xf32>
    %22 = arith.mulf %16, %16 : vector<1x64xf32>
    %23 = arith.subf %21, %22 : vector<1x64xf32>
    %cst_13 = arith.constant 9.99999974E-6 : f32
    %24 = vector.broadcast %cst_13 : f32 to vector<1x64xf32>
    %25 = arith.addf %23, %24 : vector<1x64xf32>
    %26 = math.rsqrt %25 : vector<1x64xf32>
    %27 = arith.mulf %5, %26 : vector<1x64xf32>
    %28 = arith.mulf %16, %27 : vector<1x64xf32>
    %29 = arith.subf %6, %28 : vector<1x64xf32>
    %30 = vector.broadcast %27 : vector<1x64xf32> to vector<16x64xf32>
    %31 = arith.mulf %12, %30 : vector<16x64xf32>
    %32 = vector.broadcast %29 : vector<1x64xf32> to vector<16x64xf32>
    %33 = arith.addf %31, %32 : vector<16x64xf32>
    %c0_14 = arith.constant 0 : index
    %c0_15 = arith.constant 0 : index
    %34 = vector.load %arg3[%c0_14, %c0_15] : memref<64x64xf32, #tpu.memory_space<vmem>>, vector<64x64xf32>
    %35 = vector.extract_strided_slice %1 {offsets = [3, 0], sizes = [1, 64], strides = [1, 1]} : vector<16x64xf32> to vector<1x64xf32>
    %36 = vector.extract_strided_slice %1 {offsets = [4, 0], sizes = [1, 64], strides = [1, 1]} : vector<16x64xf32> to vector<1x64xf32>
    %37 = vector.extract_strided_slice %1 {offsets = [5, 0], sizes = [1, 64], strides = [1, 1]} : vector<16x64xf32> to vector<1x64xf32>
    %cst_16 = arith.constant dense<0.000000e+00> : vector<16x64xf32>
    %38 = tpu.matmul %33, %34, %cst_16 {dimension_numbers = #tpu.dot_dimension_numbers<[1], [0], [0], [1], [0, 0, 1, 1], [], []>} : vector<16x64xf32>, vector<64x64xf32>, vector<16x64xf32> -> vector<16x64xf32>
    %cst_17 = arith.constant dense<0.000000e+00> : vector<16x64xf32>
    %39 = tpu.matmul %0, %38, %cst_17 {dimension_numbers = #tpu.dot_dimension_numbers<[1], [0], [0], [1], [0, 0, 1, 1], [], []>} : vector<16x16xf32>, vector<16x64xf32>, vector<16x64xf32> -> vector<16x64xf32>
    %40 = vector.broadcast %35 : vector<1x64xf32> to vector<16x64xf32>
    %41 = arith.addf %39, %40 : vector<16x64xf32>
    %cst_18 = arith.constant 0.000000e+00 : f32
    %42 = vector.broadcast %cst_18 : f32 to vector<16x64xf32>
    %43 = arith.maximumf %41, %42 : vector<16x64xf32>
    %cst_19 = arith.constant dense<0.000000e+00> : vector<64xf32>
    %44 = vector.multi_reduction <add>, %43, %cst_19 [0] : vector<16x64xf32> to vector<64xf32>
    %45 = vector.shape_cast %44 : vector<64xf32> to vector<1x64xf32>
    %cst_20 = arith.constant 1.600000e+01 : f32
    %46 = vector.broadcast %cst_20 : f32 to vector<1x64xf32>
    %47 = arith.divf %45, %46 : vector<1x64xf32>
    %48 = arith.mulf %43, %43 : vector<16x64xf32>
    %cst_21 = arith.constant dense<0.000000e+00> : vector<64xf32>
    %49 = vector.multi_reduction <add>, %48, %cst_21 [0] : vector<16x64xf32> to vector<64xf32>
    %50 = vector.shape_cast %49 : vector<64xf32> to vector<1x64xf32>
    %cst_22 = arith.constant 1.600000e+01 : f32
    %51 = vector.broadcast %cst_22 : f32 to vector<1x64xf32>
    %52 = arith.divf %50, %51 : vector<1x64xf32>
    %53 = arith.mulf %47, %47 : vector<1x64xf32>
    %54 = arith.subf %52, %53 : vector<1x64xf32>
    %cst_23 = arith.constant 9.99999974E-6 : f32
    %55 = vector.broadcast %cst_23 : f32 to vector<1x64xf32>
    %56 = arith.addf %54, %55 : vector<1x64xf32>
    %57 = math.rsqrt %56 : vector<1x64xf32>
    %58 = arith.mulf %36, %57 : vector<1x64xf32>
    %59 = arith.mulf %47, %58 : vector<1x64xf32>
    %60 = arith.subf %37, %59 : vector<1x64xf32>
    %61 = vector.broadcast %58 : vector<1x64xf32> to vector<16x64xf32>
    %62 = arith.mulf %43, %61 : vector<16x64xf32>
    %63 = vector.broadcast %60 : vector<1x64xf32> to vector<16x64xf32>
    %64 = arith.addf %62, %63 : vector<16x64xf32>
    %c0_24 = arith.constant 0 : index
    %c0_25 = arith.constant 0 : index
    %65 = vector.load %arg4[%c0_24, %c0_25] : memref<64x64xf32, #tpu.memory_space<vmem>>, vector<64x64xf32>
    %66 = vector.extract_strided_slice %1 {offsets = [6, 0], sizes = [1, 64], strides = [1, 1]} : vector<16x64xf32> to vector<1x64xf32>
    %67 = vector.extract_strided_slice %1 {offsets = [7, 0], sizes = [1, 64], strides = [1, 1]} : vector<16x64xf32> to vector<1x64xf32>
    %68 = vector.extract_strided_slice %1 {offsets = [8, 0], sizes = [1, 64], strides = [1, 1]} : vector<16x64xf32> to vector<1x64xf32>
    %cst_26 = arith.constant dense<0.000000e+00> : vector<16x64xf32>
    %69 = tpu.matmul %64, %65, %cst_26 {dimension_numbers = #tpu.dot_dimension_numbers<[1], [0], [0], [1], [0, 0, 1, 1], [], []>} : vector<16x64xf32>, vector<64x64xf32>, vector<16x64xf32> -> vector<16x64xf32>
    %cst_27 = arith.constant dense<0.000000e+00> : vector<16x64xf32>
    %70 = tpu.matmul %0, %69, %cst_27 {dimension_numbers = #tpu.dot_dimension_numbers<[1], [0], [0], [1], [0, 0, 1, 1], [], []>} : vector<16x16xf32>, vector<16x64xf32>, vector<16x64xf32> -> vector<16x64xf32>
    %71 = vector.broadcast %66 : vector<1x64xf32> to vector<16x64xf32>
    %72 = arith.addf %70, %71 : vector<16x64xf32>
    %cst_28 = arith.constant 0.000000e+00 : f32
    %73 = vector.broadcast %cst_28 : f32 to vector<16x64xf32>
    %74 = arith.maximumf %72, %73 : vector<16x64xf32>
    %cst_29 = arith.constant dense<0.000000e+00> : vector<64xf32>
    %75 = vector.multi_reduction <add>, %74, %cst_29 [0] : vector<16x64xf32> to vector<64xf32>
    %76 = vector.shape_cast %75 : vector<64xf32> to vector<1x64xf32>
    %cst_30 = arith.constant 1.600000e+01 : f32
    %77 = vector.broadcast %cst_30 : f32 to vector<1x64xf32>
    %78 = arith.divf %76, %77 : vector<1x64xf32>
    %79 = arith.mulf %74, %74 : vector<16x64xf32>
    %cst_31 = arith.constant dense<0.000000e+00> : vector<64xf32>
    %80 = vector.multi_reduction <add>, %79, %cst_31 [0] : vector<16x64xf32> to vector<64xf32>
    %81 = vector.shape_cast %80 : vector<64xf32> to vector<1x64xf32>
    %cst_32 = arith.constant 1.600000e+01 : f32
    %82 = vector.broadcast %cst_32 : f32 to vector<1x64xf32>
    %83 = arith.divf %81, %82 : vector<1x64xf32>
    %84 = arith.mulf %78, %78 : vector<1x64xf32>
    %85 = arith.subf %83, %84 : vector<1x64xf32>
    %cst_33 = arith.constant 9.99999974E-6 : f32
    %86 = vector.broadcast %cst_33 : f32 to vector<1x64xf32>
    %87 = arith.addf %85, %86 : vector<1x64xf32>
    %88 = math.rsqrt %87 : vector<1x64xf32>
    %89 = arith.mulf %67, %88 : vector<1x64xf32>
    %90 = arith.mulf %78, %89 : vector<1x64xf32>
    %91 = arith.subf %68, %90 : vector<1x64xf32>
    %92 = vector.broadcast %89 : vector<1x64xf32> to vector<16x64xf32>
    %93 = arith.mulf %74, %92 : vector<16x64xf32>
    %94 = vector.broadcast %91 : vector<1x64xf32> to vector<16x64xf32>
    %95 = arith.addf %93, %94 : vector<16x64xf32>
    %96 = vector.extract_strided_slice %1 {offsets = [13, 0], sizes = [1, 16], strides = [1, 1]} : vector<16x64xf32> to vector<1x16xf32>
    %c0_34 = arith.constant 0 : index
    %c0_35 = arith.constant 0 : index
    %97 = vector.load %arg5[%c0_34, %c0_35] : memref<64x16xf32, #tpu.memory_space<vmem>>, vector<64x16xf32>
    %cst_36 = arith.constant dense<0.000000e+00> : vector<16x16xf32>
    %98 = tpu.matmul %95, %97, %cst_36 {dimension_numbers = #tpu.dot_dimension_numbers<[1], [0], [0], [1], [0, 0, 1, 1], [], []>} : vector<16x64xf32>, vector<64x16xf32>, vector<16x16xf32> -> vector<16x16xf32>
    %99 = vector.broadcast %96 : vector<1x16xf32> to vector<16x16xf32>
    %100 = arith.addf %98, %99 : vector<16x16xf32>
    %c0_37 = arith.constant 0 : index
    %c0_38 = arith.constant 0 : index
    %101 = vector.load %arg10[%c0_37, %c0_38] : memref<16x16xf32, #tpu.memory_space<vmem>>, vector<16x16xf32>
    tpu.vector_store %arg10[%c0_37, %c0_38], %100 {strides = array<i32>} : memref<16x16xf32, #tpu.memory_space<vmem>>, vector<16x16xf32>,
    %102 = vector.extract_strided_slice %100 {offsets = [0, 0], sizes = [16, 8], strides = [1, 1]} : vector<16x16xf32> to vector<16x8xf32>
    %103 = vector.extract_strided_slice %100 {offsets = [0, 8], sizes = [16, 8], strides = [1, 1]} : vector<16x16xf32> to vector<16x8xf32>
    %c0_39 = arith.constant 0 : index
    %c0_40 = arith.constant 0 : index
    %104 = vector.load %arg8[%c0_39, %c0_40] : memref<16x8xf32, #tpu.memory_space<vmem>>, vector<16x8xf32>
    %105 = math.exp %103 : vector<16x8xf32>
    %106 = arith.mulf %104, %105 : vector<16x8xf32>
    %107 = arith.addf %106, %102 : vector<16x8xf32>
    %c0_41 = arith.constant 0 : index
    %c0_42 = arith.constant 0 : index
    %108 = vector.load %arg6[%c0_41, %c0_42] : memref<16x64xf32, #tpu.memory_space<vmem>>, vector<16x64xf32>
    %109 = vector.extract_strided_slice %108 {offsets = [0, 0], sizes = [8, 64], strides = [1, 1]} : vector<16x64xf32> to vector<8x64xf32>
    %cst_43 = arith.constant dense<0.000000e+00> : vector<16x64xf32>
    %110 = tpu.matmul %107, %109, %cst_43 {dimension_numbers = #tpu.dot_dimension_numbers<[1], [0], [0], [1], [0, 0, 1, 1], [], []>} : vector<16x8xf32>, vector<8x64xf32>, vector<16x64xf32> -> vector<16x64xf32>
    %111 = vector.extract_strided_slice %108 {offsets = [8, 0], sizes = [8, 64], strides = [1, 1]} : vector<16x64xf32> to vector<8x64xf32>
    %cst_44 = arith.constant dense<0.000000e+00> : vector<16x64xf32>
    %112 = tpu.matmul %107, %111, %cst_44 {dimension_numbers = #tpu.dot_dimension_numbers<[1], [0], [0], [1], [0, 0, 1, 1], [], []>} : vector<16x8xf32>, vector<8x64xf32>, vector<16x64xf32> -> vector<16x64xf32>
    %113 = tpu.concatenate %110, %112 in 0 : vector<16x64xf32>, vector<16x64xf32> -> vector<32x64xf32>
    %c0_45 = arith.constant 0 : index
    %c0_46 = arith.constant 0 : index
    %114 = vector.load %arg7[%c0_45, %c0_46] : memref<56x32xf32, #tpu.memory_space<vmem>>, vector<56x32xf32>
    %cst_47 = arith.constant dense<0.000000e+00> : vector<56x64xf32>
    %115 = tpu.matmul %114, %113, %cst_47 {dimension_numbers = #tpu.dot_dimension_numbers<[1], [0], [0], [1], [0, 0, 1, 1], [], []>} : vector<56x32xf32>, vector<32x64xf32>, vector<56x64xf32> -> vector<56x64xf32>
    %116 = vector.extract_strided_slice %1 {offsets = [9, 0], sizes = [1, 64], strides = [1, 1]} : vector<16x64xf32> to vector<1x64xf32>
    %117 = vector.broadcast %116 : vector<1x64xf32> to vector<56x64xf32>
    %118 = arith.addf %115, %117 : vector<56x64xf32>
    %cst_48 = arith.constant 0.000000e+00 : f32
    %119 = vector.broadcast %cst_48 : f32 to vector<56x64xf32>
    %120 = arith.maximumf %118, %119 : vector<56x64xf32>
    %121 = vector.extract_strided_slice %1 {offsets = [10, 0], sizes = [1, 64], strides = [1, 1]} : vector<16x64xf32> to vector<1x64xf32>
    %122 = vector.extract_strided_slice %1 {offsets = [11, 0], sizes = [1, 64], strides = [1, 1]} : vector<16x64xf32> to vector<1x64xf32>
    %cst_49 = arith.constant dense<0.000000e+00> : vector<64xf32>
    %123 = vector.multi_reduction <add>, %120, %cst_49 [0] : vector<56x64xf32> to vector<64xf32>
    %124 = vector.shape_cast %123 : vector<64xf32> to vector<1x64xf32>
    %cst_50 = arith.constant 5.600000e+01 : f32
    %125 = vector.broadcast %cst_50 : f32 to vector<1x64xf32>
    %126 = arith.divf %124, %125 : vector<1x64xf32>
    %127 = arith.mulf %120, %120 : vector<56x64xf32>
    %cst_51 = arith.constant dense<0.000000e+00> : vector<64xf32>
    %128 = vector.multi_reduction <add>, %127, %cst_51 [0] : vector<56x64xf32> to vector<64xf32>
    %129 = vector.shape_cast %128 : vector<64xf32> to vector<1x64xf32>
    %cst_52 = arith.constant 5.600000e+01 : f32
    %130 = vector.broadcast %cst_52 : f32 to vector<1x64xf32>
    %131 = arith.divf %129, %130 : vector<1x64xf32>
    %132 = arith.mulf %126, %126 : vector<1x64xf32>
    %133 = arith.subf %131, %132 : vector<1x64xf32>
    %cst_53 = arith.constant 9.99999974E-6 : f32
    %134 = vector.broadcast %cst_53 : f32 to vector<1x64xf32>
    %135 = arith.addf %133, %134 : vector<1x64xf32>
    %136 = math.rsqrt %135 : vector<1x64xf32>
    %137 = arith.mulf %121, %136 : vector<1x64xf32>
    %138 = arith.mulf %126, %137 : vector<1x64xf32>
    %139 = arith.subf %122, %138 : vector<1x64xf32>
    %140 = vector.broadcast %137 : vector<1x64xf32> to vector<56x64xf32>
    %141 = arith.mulf %120, %140 : vector<56x64xf32>
    %142 = vector.broadcast %139 : vector<1x64xf32> to vector<56x64xf32>
    %143 = arith.addf %141, %142 : vector<56x64xf32>
    %144 = vector.extract_strided_slice %1 {offsets = [12, 0], sizes = [1, 64], strides = [1, 1]} : vector<16x64xf32> to vector<1x64xf32>
    %145 = vector.extract_strided_slice %1 {offsets = [14, 0], sizes = [1, 1], strides = [1, 1]} : vector<16x64xf32> to vector<1x1xf32>
    %146 = vector.broadcast %144 : vector<1x64xf32> to vector<56x64xf32>
    %147 = arith.mulf %143, %146 : vector<56x64xf32>
    %cst_54 = arith.constant dense<0.000000e+00> : vector<56xf32>
    %148 = vector.multi_reduction <add>, %147, %cst_54 [1] : vector<56x64xf32> to vector<56xf32>
    %149 = vector.shape_cast %148 : vector<56xf32> to vector<56x1xf32>
    %150 = vector.broadcast %145 : vector<1x1xf32> to vector<56x1xf32>
    %151 = arith.addf %149, %150 : vector<56x1xf32>
    %c0_55 = arith.constant 0 : index
    %c0_56 = arith.constant 0 : index
    %152 = vector.load %arg11[%c0_55, %c0_56] : memref<56x1xf32, #tpu.memory_space<vmem>>, vector<56x1xf32>
    tpu.vector_store %arg11[%c0_55, %c0_56], %151 {strides = array<i32>} : memref<56x1xf32, #tpu.memory_space<vmem>>, vector<56x1xf32>,
    return
  }
}

</mosaic_0001>

<bundles_post_ra>
// kernel: gvae_forward.1
= control target key start
LH: loop header
LB: loop body
LE: loop exit
PB: predicated region body
PF: predicated region fallthrough
CT: control target
= control target key end

     0   :  { %vm45_vm0 = vcmask 130048   ;;  %v127_v22 = vlaneseq  ;;  %vm214_vm1 = vcmask 523264   ;;  %vm803_vm2 = vcmask 64512   ;;  %s1912_s2 = inlined_call_operand.vmem [shape: f32[16,64], index: 2, kind: input, shape index: {}]   ;;  %s1913_s1 = inlined_call_operand.vmem [shape: f32[16,16], index: 1, kind: input, shape index: {}]   ;;  %s1914_s0 = inlined_call_operand.vmem [shape: f32[16,16], index: 0, kind: input, shape index: {}]   ;;  %s1915_s3 = inlined_call_operand.vmem [shape: f32[64,64], index: 3, kind: input, shape index: {}]   ;;  %s1916_s9 = inlined_call_operand.vmem [shape: f32[16,64], index: 9, kind: input, shape index: {}]   ;;  %s1917_s4 = inlined_call_operand.vmem [shape: f32[64,64], index: 4, kind: input, shape index: {}]   ;;  %s1918_s5 = inlined_call_operand.vmem [shape: f32[64,16], index: 5, kind: input, shape index: {}]   ;;  %s1919_s10 = inlined_call_operand.vmem [shape: f32[16,16], index: 10, kind: output, shape index: {0}]   ;;  %s1920_s6 = inlined_call_operand.vmem [shape: f32[16,64], index: 6, kind: input, shape index: {}]   ;;  %s1921_s8 = inlined_call_operand.vmem [shape: f32[16,8], index: 8, kind: input, shape index: {}]   ;;  %s1922_s7 = inlined_call_operand.vmem [shape: f32[56,32], index: 7, kind: input, shape index: {}]   ;;  %s1923_s11 = inlined_call_operand.vmem [shape: f32[56,1], index: 11, kind: output, shape index: {1}]  }
   0x1   :  { %v43_v0 = vld [vmem:[%s1912_s2] sm:$0xff]  ;;  %v44_v1 = vld [vmem:[%s1912_s2 + $0x8] sm:$0xff]  ;;  %v262_v12 = vld [vmem:[%s1915_s3 + $0x10] sm:$0xff]  ;;  %vm1539_vm3 = vmmov 0   ;;  %vm971_vm4 = vcmask 261120   ;;  %vm1223_vm5 = vcmask 7168  }
   0x2   :  { %v41_v2 = vld [vmem:[%s1913_s1] sm:$0xff]  ;;  %v1451_v3 = vpack.c.bf16 %v44_v1, %v43_v0  ;;  %v42_v4 = vld [vmem:[%s1913_s1 + $0x8] sm:$0xff]  ;;  %v263_v14 = vld [vmem:[%s1915_s3 + $0x18] sm:$0xff]  ;;  %v1655_v23 = vshrl.u32 %v127_v22, 7 }
   0x3   :  { %1331 = vmatprep.mubr.msk.f32.mxu1 %vm45_vm0, %v41_v2  ;;  %v1618_v5 = vld [vmem:[%s1914_s0] sm:$0xff]  ;;  %v1625_v9 = vld [vmem:[%s1914_s0 + $0x8] sm:$0xff]  ;;  %v1463_v15 = vpack.c.bf16 %v263_v14, %v262_v12  ;;  %v266_v19 = vld [vmem:[%s1915_s3 + $0x30] sm:$0xff] }
   0x4   :  { %1452 = vmatprep.subr.bf16.mxu1 %v1451_v3  ;;  %v260_v10 = vld [vmem:[%s1915_s3] sm:$0xff]  ;;  %v261_v11 = vld [vmem:[%s1915_s3 + $0x8] sm:$0xff]  ;;  %v267_v20 = vld [vmem:[%s1915_s3 + $0x38] sm:$0xff]  ;;  %v129_v24 = vsub.s32 0, %v1655_v23  ;;  %v250_v58 = vsub.s32 1, %v1655_v23  ;;  %v256_v2 = vsub.s32 2, %v1655_v23 }
   0x5   :  { %1454 = vmatpush3.bf16.msra.mxu1 %v1451_v3  ;;  %v1459_v13 = vpack.c.bf16 %v261_v11, %v260_v10  ;;  %v264_v16 = vld [vmem:[%s1915_s3 + $0x20] sm:$0xff]  ;;  %v265_v17 = vld [vmem:[%s1915_s3 + $0x28] sm:$0xff]  ;;  %v1471_v21 = vpack.c.bf16 %v267_v20, %v266_v19  ;;  %v481_v22 = vld [vmem:[%s1917_s4 + $0x38] sm:$0xff] }
   0x6   :  { %v1467_v18 = vpack.c.bf16 %v265_v17, %v264_v16  ;;  %v1661_v25 = vld [vmem:[%s1916_s9] sm:$0xff]  ;;  %v477_v16 = vld [vmem:[%s1917_s4 + $0x18] sm:$0xff]  ;;  %v479_v19 = vld [vmem:[%s1917_s4 + $0x28] sm:$0xff] }
   0x7   :  { %1460 = vmatprep.subr.bf16.mxu0 %v1459_v13  ;;  %v130_v26 = vrot.slane %v1661_v25, %v129_v24  ;;  %v474_v12 = vld [vmem:[%s1917_s4] sm:$0xff] }
   0x8   :  { %1332 = vmatmul.mubr.msk.f32.vlgmr.msra.gmra.mrb[0].mxu1 %vm45_vm0, %v42_v4  ;;  %1462 = vmatpush3.bf16.msra.mxu0 %v1459_v13  ;;  %v475_v13 = vld [vmem:[%s1917_s4 + $0x8] sm:$0xff] }
   0x9   :  { %1338 = vmatprep.mubr.msk.f32.mxu1 %vm45_vm0, %v1618_v5  ;;  %1464 = vmatprep.subr.bf16.mxu0 %v1463_v15  ;;  %v1479_v14 = vpack.c.bf16 %v475_v13, %v474_v12 }
   0xc   :  { %1466 = vmatpush3.bf16.msra.mxu0 %v1463_v15  ;;  %v476_v15 = vld [vmem:[%s1917_s4 + $0x10] sm:$0xff] }
   0xd   :  { %1468 = vmatprep.subr.bf16.mxu0 %v1467_v18  ;;  %v1483_v17 = vpack.c.bf16 %v477_v16, %v476_v15  ;;  %v688_v16 = vld [vmem:[%s1918_s5] sm:$0xff] }
  0x10   :  { %1470 = vmatpush3.bf16.msra.mxu0 %v1467_v18  ;;  %v478_v18 = vld [vmem:[%s1917_s4 + $0x20] sm:$0xff] }
  0x11   :  { %1472 = vmatprep.subr.bf16.mxu0 %v1471_v21  ;;  %v1487_v20 = vpack.c.bf16 %v479_v19, %v478_v18  ;;  %v691_v19 = vld [vmem:[%s1918_s5 + $0x18] sm:$0xff] }
  0x14   :  { %1474 = vmatpush3.bf16.msra.mxu0 %v1471_v21  ;;  %v480_v21 = vld [vmem:[%s1917_s4 + $0x30] sm:$0xff]  ;;  %s1537_s4 = smov 120  }
  0x15   :  { %1480 = vmatprep.subr.bf16.mxu0 %v1479_v14 }
  0xdb   :  { %v1333_v6 = vpop.f32.mrb[0].mxu1 }
  0xdc   :  { %v118_v7 = vpop.f32.mrb[1].mxu1 }
  0xdd   :  { %v1455_v8 = vpack.c.bf16 %v1333_v6, %v118_v7 }
  0xdf   :  { %1456 = vmatprep.subr.bf16.mxu1 %v1455_v8 }
  0xe0   :  { %1458 = vmatpush3.bf16.msra.mxu1 %v1455_v8 }
  0xe3   :  { %1339 = vmatmul.mubr.msk.f32.vlgmr.msra.gmra.mrb[2].mxu1 %vm45_vm0, %v1625_v9 }
  0xe4   :  { %1364 = vmatprep.mubr.msk.f32.mxu1 %vm45_vm0, %v1618_v5 }
 0x1b6   :  { %v1340_v27 = vpop.f32.mrb[2].mxu1 }
 0x1b7   :  { %v209_v28 = vadd.f32 %v1340_v27, %v130_v26  ;;  %v203_v29 = vpop.f32.mrb[3].mxu1  ;;  %v351_v27 = vsub.s32 3, %v1655_v23 }
 0x1b8   :  { %v204_v30 = vadd.f32 %v203_v29, %v130_v26  ;;  %v1491_v26 = vpack.c.bf16 %v481_v22, %v480_v21  ;;  %v693_v21 = vld [vmem:[%s1918_s5 + $0x28] sm:$0xff] }
 0x1b9   :  { %v213_v31 = vmax.f32 %v209_v28, 0.0  ;;  %v352_v28 = vrot.slane %v1661_v25, %v351_v27 }
 0x1ba   :  { %v212_v32 = vmax.f32 %v204_v30, 0.0 }
 0x1bb   :  { %v216_v33 = vsel %vm214_vm1, %v213_v31, 0.0  ;;  %v227_v34 = vmul.f32 %v213_v31, %v213_v31 }
 0x1bc   :  { %v215_v35 = vsel %vm214_vm1, %v212_v32, 0.0  ;;  %v226_v36 = vmul.f32 %v212_v32, %v212_v32 }
 0x1bd   :  { %v229_v37 = vsel %vm214_vm1, %v227_v34, 0.0  ;;  %v217_v38 = vadd.f32 %v216_v33, %v215_v35 }
 0x1be   :  { %v228_v39 = vsel %vm214_vm1, %v226_v36, 0.0 }
 0x1bf   :  { %v218_v40 = vrot.slane %v217_v38, 4  ;;  %v230_v41 = vadd.f32 %v229_v37, %v228_v39 }
 0x1c1   :  { %v219_v42 = vadd.f32 %v218_v40, %v217_v38  ;;  %v231_v43 = vrot.slane %v230_v41, 4 }
 0x1c3   :  { %v220_v44 = vrot.slane %v219_v42, 2  ;;  %v232_v45 = vadd.f32 %v231_v43, %v230_v41 }
 0x1c5   :  { %v221_v46 = vadd.f32 %v220_v44, %v219_v42  ;;  %v233_v47 = vrot.slane %v232_v45, 2 }
 0x1c7   :  { %v234_v48 = vadd.f32 %v233_v47, %v232_v45  ;;  %v222_v49 = vrot.slane %v221_v46, 1 }
 0x1c9   :  { %v235_v50 = vrot.slane %v234_v48, 1  ;;  %v223_v51 = vadd.f32 %v222_v49, %v221_v46 }
 0x1cb   :  { %v236_v52 = vadd.f32 %v235_v50, %v234_v48  ;;  %v225_v53 = vmul.f32 0.0625, %v223_v51 }
 0x1cd   :  { %v237_v54 = vmul.f32 0.0625, %v236_v52  ;;  %v238_v55 = vmul.f32 %v225_v53, %v225_v53 }
 0x1cf   :  { %v239_v56 = vsub.f32 %v237_v54, %v238_v55 }
 0x1d1   :  { %v240_v57 = vadd.f32 1e-05, %v239_v56 }
 0x1d3   :  { %1525 = vrsqrt.f32 %v240_v57 }
 0x1dd   :  { %v1526_v59 = vpop.eup %1525 }
 0x1de   :  { %v242_v60 = vmul.f32 %v1526_v59, %v1661_v25 }
 0x1e0   :  { %v243_v61 = vmul.f32 %v242_v60, %v225_v53  ;;  %v251_v62 = vrot.slane %v242_v60, %v250_v58 }
 0x1e2   :  { %v245_v63 = vrot.slane %v243_v61, 7  ;;  %v252_v0 = vmul.f32 %v251_v62, %v212_v32  ;;  %v253_v1 = vmul.f32 %v251_v62, %v213_v31  ;;  %v464_v61 = vsub.s32 4, %v1655_v23 }
 0x1e4   :  { %v247_v3 = vsub.f32 %v1661_v25, %v245_v63 }
 0x1e6   :  { %v257_v4 = vrot.slane %v247_v3, %v256_v2 }
 0x1e8   :  { %v258_v6 = vadd.f32 %v257_v4, %v252_v0  ;;  %v259_v7 = vadd.f32 %v257_v4, %v253_v1 }
 0x1ea   :  { %1357 = vmatprep.mubr.msk.f32.mxu0 %vm214_vm1, %v258_v6 }
 0x1eb   :  { %1358 = vmatmul.mubr.msk.f32.vlgmr.msra.gmra.mrb[0].mxu0 %vm214_vm1, %v259_v7  ;;  %v470_v7 = vsub.s32 5, %v1655_v23 }
 0x1ec   :  { %1482 = vmatpush3.bf16.msra.mxu0 %v1479_v14 }
 0x1ed   :  { %1484 = vmatprep.subr.bf16.mxu0 %v1483_v17 }
 0x1f0   :  { %1486 = vmatpush3.bf16.msra.mxu0 %v1483_v17  ;;  %v689_v17 = vld [vmem:[%s1918_s5 + $0x8] sm:$0xff] }
 0x1f1   :  { %1488 = vmatprep.subr.bf16.mxu0 %v1487_v20  ;;  %v1499_v18 = vpack.c.bf16 %v689_v17, %v688_v16 }
 0x1f4   :  { %1490 = vmatpush3.bf16.msra.mxu0 %v1487_v20  ;;  %v692_v20 = vld [vmem:[%s1918_s5 + $0x20] sm:$0xff] }
 0x1f5   :  { %1492 = vmatprep.subr.bf16.mxu0 %v1491_v26  ;;  %v1507_v22 = vpack.c.bf16 %v693_v21, %v692_v20  ;;  %v802_v21 = vld [vmem:[%s1920_s6 + $0x8] sm:$0xff] }
 0x1f8   :  { %1494 = vmatpush3.bf16.msra.mxu0 %v1491_v26  ;;  %v694_v26 = vld [vmem:[%s1918_s5 + $0x30] sm:$0xff] }
 0x2be   :  { %v1359_v8 = vpop.f32.mrb[0].mxu0 }
 0x2bf   :  { %v340_v10 = vpop.f32.mrb[1].mxu0 }
 0x2c0   :  { %v1475_v11 = vpack.c.bf16 %v1359_v8, %v340_v10 }
 0x2c2   :  { %1476 = vmatprep.subr.bf16.mxu1 %v1475_v11 }
 0x2c3   :  { %1478 = vmatpush3.bf16.msra.mxu1 %v1475_v11 }
 0x2c6   :  { %1365 = vmatmul.mubr.msk.f32.vlgmr.msra.gmra.mrb[4].mxu1 %vm45_vm0, %v1625_v9 }
 0x399   :  { %v1366_v29 = vpop.f32.mrb[4].mxu1 }
 0x39a   :  { %v425_v30 = vadd.f32 %v1366_v29, %v352_v28  ;;  %v419_v31 = vpop.f32.mrb[5].mxu1 }
 0x39b   :  { %v420_v32 = vadd.f32 %v419_v31, %v352_v28  ;;  %v695_v28 = vld [vmem:[%s1918_s5 + $0x38] sm:$0xff] }
 0x39c   :  { %v429_v33 = vmax.f32 %v425_v30, 0.0  ;;  %v1511_v29 = vpack.c.bf16 %v695_v28, %v694_v26  ;;  %v565_v30 = vsub.s32 6, %v1655_v23  ;;  %v783_v28 = vld [vmem:[%s1921_s8] sm:$0xff] }
 0x39d   :  { %v428_v34 = vmax.f32 %v420_v32, 0.0 }
 0x39e   :  { %v431_v35 = vsel %vm214_vm1, %v429_v33, 0.0  ;;  %v441_v36 = vmul.f32 %v429_v33, %v429_v33  ;;  %v566_v31 = vrot.slane %v1661_v25, %v565_v30 }
 0x39f   :  { %v430_v37 = vsel %vm214_vm1, %v428_v34, 0.0  ;;  %v440_v38 = vmul.f32 %v428_v34, %v428_v34 }
 0x3a0   :  { %v443_v39 = vsel %vm214_vm1, %v441_v36, 0.0  ;;  %v432_v40 = vadd.f32 %v431_v35, %v430_v37 }
 0x3a1   :  { %v442_v41 = vsel %vm214_vm1, %v440_v38, 0.0 }
 0x3a2   :  { %v433_v42 = vrot.slane %v432_v40, 4  ;;  %v444_v43 = vadd.f32 %v443_v39, %v442_v41 }
 0x3a4   :  { %v434_v44 = vadd.f32 %v433_v42, %v432_v40  ;;  %v445_v45 = vrot.slane %v444_v43, 4 }
 0x3a6   :  { %v435_v46 = vrot.slane %v434_v44, 2  ;;  %v446_v47 = vadd.f32 %v445_v45, %v444_v43 }
 0x3a8   :  { %v436_v48 = vadd.f32 %v435_v46, %v434_v44  ;;  %v447_v49 = vrot.slane %v446_v47, 2 }
 0x3aa   :  { %v437_v50 = vrot.slane %v436_v48, 1  ;;  %v448_v51 = vadd.f32 %v447_v49, %v446_v47 }
 0x3ac   :  { %v438_v52 = vadd.f32 %v437_v50, %v436_v48  ;;  %v449_v53 = vrot.slane %v448_v51, 1 }
 0x3ae   :  { %v439_v54 = vmul.f32 0.0625, %v438_v52  ;;  %v450_v55 = vadd.f32 %v449_v53, %v448_v51 }
 0x3b0   :  { %v451_v56 = vmul.f32 0.0625, %v450_v55  ;;  %v452_v57 = vmul.f32 %v439_v54, %v439_v54 }
 0x3b2   :  { %v453_v59 = vsub.f32 %v451_v56, %v452_v57 }
 0x3b4   :  { %v454_v60 = vadd.f32 1e-05, %v453_v59 }
 0x3b6   :  { %1527 = vrsqrt.f32 %v454_v60 }
 0x3c0   :  { %v1528_v62 = vpop.eup %1527 }
 0x3c1   :  { %v456_v63 = vmul.f32 %v1528_v62, %v1661_v25 }
 0x3c3   :  { %v457_v0 = vmul.f32 %v456_v63, %v439_v54  ;;  %v465_v1 = vrot.slane %v456_v63, %v464_v61 }
 0x3c5   :  { %v459_v3 = vrot.slane %v457_v0, 7  ;;  %v466_v4 = vmul.f32 %v465_v1, %v428_v34  ;;  %v467_v6 = vmul.f32 %v465_v1, %v429_v33  ;;  %v678_v1 = vsub.s32 7, %v1655_v23 }
 0x3c7   :  { %v461_v8 = vsub.f32 %v1661_v25, %v459_v3 }
 0x3c9   :  { %v471_v10 = vrot.slane %v461_v8, %v470_v7 }
 0x3cb   :  { %v472_v11 = vadd.f32 %v471_v10, %v466_v4  ;;  %v473_v12 = vadd.f32 %v471_v10, %v467_v6  ;;  %v1765_v10 = vld [vmem:[%s1916_s9 + $0x8] sm:$0xff] }
 0x3cd   :  { %1383 = vmatprep.mubr.msk.f32.mxu0 %vm214_vm1, %v472_v11 }
 0x3ce   :  { %1384 = vmatmul.mubr.msk.f32.vlgmr.msra.gmra.mrb[2].mxu0 %vm214_vm1, %v473_v12 }
 0x3cf   :  { %1390 = vmatprep.mubr.msk.f32.mxu0 %vm45_vm0, %v1618_v5  ;;  %v690_v5 = vld [vmem:[%s1918_s5 + $0x10] sm:$0xff] }
 0x4a1   :  { %v1385_v13 = vpop.f32.mrb[2].mxu0 }
 0x4a2   :  { %v554_v14 = vpop.f32.mrb[3].mxu0 }
 0x4a3   :  { %v1495_v15 = vpack.c.bf16 %v1385_v13, %v554_v14 }
 0x4a5   :  { %1496 = vmatprep.subr.bf16.mxu0 %v1495_v15 }
 0x4a6   :  { %1498 = vmatpush3.bf16.msra.mxu0 %v1495_v15 }
 0x4a7   :  { %1500 = vmatprep.subr.bf16.mxu0 %v1499_v18 }
 0x4a9   :  { %1391 = vmatmul.mubr.msk.f32.vlgmr.msra.gmra.mrb[4].mxu0 %vm45_vm0, %v1625_v9  ;;  %v1503_v9 = vpack.c.bf16 %v691_v19, %v690_v5 }
 0x4aa   :  { %1502 = vmatpush3.bf16.msra.mxu0 %v1499_v18 }
 0x4ab   :  { %1504 = vmatprep.subr.bf16.mxu0 %v1503_v9 }
 0x4ae   :  { %1506 = vmatpush3.bf16.msra.mxu0 %v1503_v9 }
 0x4af   :  { %1508 = vmatprep.subr.bf16.mxu0 %v1507_v22 }
 0x4b2   :  { %1510 = vmatpush3.bf16.msra.mxu0 %v1507_v22 }
 0x4b3   :  { %1512 = vmatprep.subr.bf16.mxu0 %v1511_v29 }
 0x4b6   :  { %1514 = vmatpush3.bf16.msra.mxu0 %v1511_v29 }
 0x57c   :  { %v1392_v32 = vpop.f32.mrb[4].mxu0 }
 0x57d   :  { %v639_v33 = vadd.f32 %v1392_v32, %v566_v31  ;;  %v633_v34 = vpop.f32.mrb[5].mxu0  ;;  %v784_v32 = vld [vmem:[%s1921_s8 + $0x8] sm:$0xff] }
 0x57e   :  { %v634_v35 = vadd.f32 %v633_v34, %v566_v31 }
 0x57f   :  { %v643_v36 = vmax.f32 %v639_v33, 0.0 }
 0x580   :  { %v642_v37 = vmax.f32 %v634_v35, 0.0 }
 0x581   :  { %v645_v38 = vsel %vm214_vm1, %v643_v36, 0.0  ;;  %v655_v39 = vmul.f32 %v643_v36, %v643_v36 }
 0x582   :  { %v644_v40 = vsel %vm214_vm1, %v642_v37, 0.0  ;;  %v654_v41 = vmul.f32 %v642_v37, %v642_v37 }
 0x583   :  { %v657_v42 = vsel %vm214_vm1, %v655_v39, 0.0  ;;  %v646_v43 = vadd.f32 %v645_v38, %v644_v40  ;;  %v1540_v38 = vmov 0.0  }
 0x584   :  { %v656_v44 = vsel %vm214_vm1, %v654_v41, 0.0 }
 0x585   :  { %v647_v45 = vrot.slane %v646_v43, 4  ;;  %v658_v46 = vadd.f32 %v657_v42, %v656_v44 }
 0x587   :  { %v648_v47 = vadd.f32 %v647_v45, %v646_v43  ;;  %v659_v48 = vrot.slane %v658_v46, 4  ;;  %v960_v45 = vld [vmem:[%s1922_s7] sm:$0xff] }
 0x589   :  { %v649_v49 = vrot.slane %v648_v47, 2  ;;  %v660_v50 = vadd.f32 %v659_v48, %v658_v46  ;;  %v961_v46 = vld [vmem:[%s1922_s7 + $0x8] sm:$0xff]  ;;  %v963_v48 = vld [vmem:[%s1922_s7 + $0x18] sm:$0xff] }
 0x58b   :  { %v650_v51 = vadd.f32 %v649_v49, %v648_v47  ;;  %v661_v52 = vrot.slane %v660_v50, 2  ;;  %v962_v47 = vld [vmem:[%s1922_s7 + $0x10] sm:$0xff]  ;;  %v964_v49 = vld [vmem:[%s1922_s7 + $0x20] sm:$0xff] }
 0x58d   :  { %v651_v53 = vrot.slane %v650_v51, 1  ;;  %v662_v54 = vadd.f32 %v661_v52, %v660_v50  ;;  %v965_v50 = vld [vmem:[%s1922_s7 + $0x28] sm:$0xff]  ;;  %v970_v52 = vrot.slane %v1765_v10, %v250_v58 }
 0x58f   :  { %v652_v55 = vadd.f32 %v651_v53, %v650_v51  ;;  %v663_v56 = vrot.slane %v662_v54, 1  ;;  %v966_v51 = vld [vmem:[%s1922_s7 + $0x30] sm:$0xff] }
 0x591   :  { %v653_v57 = vmul.f32 0.0625, %v652_v55  ;;  %v664_v59 = vadd.f32 %v663_v56, %v662_v54 }
 0x593   :  { %v665_v60 = vmul.f32 0.0625, %v664_v59  ;;  %v666_v62 = vmul.f32 %v653_v57, %v653_v57 }
 0x595   :  { %v667_v63 = vsub.f32 %v665_v60, %v666_v62 }
 0x597   :  { %v668_v0 = vadd.f32 1e-05, %v667_v63 }
 0x599   :  { %1529 = vrsqrt.f32 %v668_v0 }
 0x5a3   :  { %v1530_v3 = vpop.eup %1529 }
 0x5a4   :  { %v670_v4 = vmul.f32 %v1530_v3, %v1661_v25  ;;  %v699_v25 = vrot.slane %v1765_v10, %v470_v7  ;;  %v801_v7 = vld [vmem:[%s1920_s6] sm:$0xff] }
 0x5a5   :  { %1412 = vmatprep.subr.mxu1 %v801_v7 }
 0x5a6   :  { %v671_v6 = vmul.f32 %v670_v4, %v653_v57  ;;  %v679_v8 = vrot.slane %v670_v4, %v678_v1  ;;  %1413 = vmatpush3.msra.mxu1 %v801_v7 }
 0x5a7   :  { %1417 = vmatprep.subr.mxu1 %v802_v21 }
 0x5a8   :  { %v673_v11 = vrot.slane %v671_v6, 7  ;;  %v680_v12 = vmul.f32 %v679_v8, %v642_v37  ;;  %v681_v13 = vmul.f32 %v679_v8, %v643_v36  ;;  %v1538_v37 = vmov 0.0|0.0  }
 0x5aa   :  { %v675_v14 = vsub.f32 %v1765_v10, %v673_v11 }
 0x5ac   :  { %v685_v15 = vrot.slane %v675_v14, %v129_v24 }
 0x5ae   :  { %v686_v16 = vadd.f32 %v685_v15, %v680_v12  ;;  %v687_v17 = vadd.f32 %v685_v15, %v681_v13 }
 0x5b0   :  { %1409 = vmatprep.mubr.msk.f32.mxu0 %vm214_vm1, %v686_v16 }
 0x5b1   :  { %1410 = vmatmul.mubr.msk.f32.vlgmr.msra.gmra.mrb[6].mxu0 %vm214_vm1, %v687_v17 }
 0x684   :  { %v1411_v18 = vpop.f32.mrb[6].mxu0 }
 0x685   :  { %v778_v5 = vadd.f32 %v1411_v18, %v699_v25  ;;  %v772_v19 = vpop.f32.mrb[7].mxu0 }
 0x686   :  { %v773_v9 = vadd.f32 %v772_v19, %v699_v25 }
 0x687   :  { %782 = vst.msk [vmem:[%s1919_s10 + $0x8] sm:$0xff] %vm45_vm0, %v778_v5  ;;  %v787_v20 = vmul.f32 1.442695, %v778_v5 }
 0x688   :  { %781 = vst.msk [vmem:[%s1919_s10] sm:$0xff] %vm45_vm0, %v773_v9  ;;  %v785_v24 = vmul.f32 1.442695, %v773_v9 }
 0x68a   :  { %1531 = vpow2.f32 %v785_v24 }
 0x68b   :  { %1533 = vpow2.f32 %v787_v20 }
 0x694   :  { %v1532_v22 = vpop.eup %1531 }
 0x695   :  { %791 = vrot.lane.b32.xlu0 %v1532_v22, %s1537_s4  ;;  %v1534_v26 = vpop.eup %1533 }
 0x699   :  { %793 = vrot.lane.b32.xlu0 %v1534_v26, %s1537_s4 }
 0x707   :  { %v792_v29 = vpop.permute.xlu0 %791 }
 0x708   :  { %v797_v31 = vmul.f32 %v792_v29, %v783_v28 }
 0x70a   :  { %v799_v33 = vadd.f32 %v797_v31, %v773_v9 }
 0x70b   :  { %v794_v34 = vpop.permute.xlu0 %793 }
 0x70c   :  { %v798_v35 = vmul.f32 %v794_v34, %v784_v32  ;;  %1414 = vmatprep.mubr.msk.f32.mxu1 %vm803_vm2, %v799_v33 }
 0x70e   :  { %v800_v36 = vadd.f32 %v798_v35, %v778_v5 }
 0x710   :  { %1415 = vmatmul.mubr.msk.f32.vlgmr.msra.gmra.mrb[6].mxu1 %vm803_vm2, %v800_v36 }
 0x711   :  { %1418 = vmatpush3.msra.mxu1 %v802_v21  ;;  %1419 = vmatprep.mubr.msk.f32.mxu1 %vm803_vm2, %v799_v33 }
 0x712   :  { %1515 = vmatprep.subr.bf16.mxu1 %v1538_v37 }
 0x714   :  { %1420 = vmatmul.mubr.msk.f32.vlgmr.msra.gmra.mrb[8].mxu1 %vm803_vm2, %v800_v36 }
 0x715   :  { %1430 = vmatprep.mubr.msk.f32.mxu1 %vm1539_vm3, %v1540_v38 }
 0x7e3   :  { %v1416_v39 = vpop.f32.mrb[6].mxu1 }
 0x7e4   :  { %v876_v40 = vpop.f32.mrb[7].mxu1 }
 0x7e5   :  { %v1516_v41 = vpack.c.bf16 %v1416_v39, %v876_v40 }
 0x7e7   :  { %v1421_v42 = vpop.f32.mrb[8].mxu1  ;;  %1517 = vmatpush3.bf16.msra.mxu1 %v1516_v41 }
 0x7e8   :  { %v951_v43 = vpop.f32.mrb[9].mxu1  ;;  %1518 = vmatprep.subr.bf16.mxu1 %v1538_v37 }
 0x7e9   :  { %v1519_v44 = vpack.c.bf16 %v1421_v42, %v951_v43 }
 0x7eb   :  { %1520 = vmatpush3.bf16.msra.mxu1 %v1519_v44 }
 0x7ee   :  { %1431 = vmatmul.mubr.msk.f32.vlgmr.msra.gmra.mrb[10].mxu1 %vm971_vm4, %v960_v45 }
 0x7ef   :  { %1433 = vmatprep.mubr.msk.f32.mxu1 %vm1539_vm3, %v1540_v38 }
 0x7f2   :  { %1434 = vmatmul.mubr.msk.f32.gmra.mrb[12].mxu1 %vm971_vm4, %v961_v46 }
 0x7f3   :  { %1436 = vmatprep.mubr.msk.f32.mxu1 %vm1539_vm3, %v1540_v38 }
 0x7f6   :  { %1437 = vmatmul.mubr.msk.f32.gmra.mrb[14].mxu1 %vm971_vm4, %v962_v47 }
 0x7f7   :  { %1439 = vmatprep.mubr.msk.f32.mxu1 %vm1539_vm3, %v1540_v38 }
 0x7fa   :  { %1440 = vmatmul.mubr.msk.f32.gmra.mrb[16].mxu1 %vm971_vm4, %v963_v48 }
 0x7fb   :  { %1442 = vmatprep.mubr.msk.f32.mxu1 %vm1539_vm3, %v1540_v38 }
 0x7fe   :  { %1443 = vmatmul.mubr.msk.f32.gmra.mrb[18].mxu1 %vm971_vm4, %v964_v49 }
 0x7ff   :  { %1445 = vmatprep.mubr.msk.f32.mxu1 %vm1539_vm3, %v1540_v38 }
 0x802   :  { %1446 = vmatmul.mubr.msk.f32.gmra.mrb[20].mxu1 %vm971_vm4, %v965_v50 }
 0x803   :  { %1448 = vmatprep.mubr.msk.f32.mxu1 %vm1539_vm3, %v1540_v38 }
 0x806   :  { %1449 = vmatmul.mubr.msk.f32.gmra.mrb[22].mxu1 %vm971_vm4, %v966_v51 }
 0x8c1   :  { %v1059_v53 = vpop.f32.mrb[10].mxu1 }
 0x8c2   :  { %v1060_v54 = vadd.f32 %v1059_v53, %v970_v52  ;;  %v1432_v55 = vpop.f32.mrb[11].mxu1 }
 0x8c4   :  { %v1833_v56 = vmax.f32 %v1060_v54, 0.0 }
 0x8c5   :  { %v1064_v57 = vpop.f32.mrb[12].mxu1 }
 0x8c6   :  { %v1065_v59 = vadd.f32 %v1064_v57, %v970_v52  ;;  %v1435_v60 = vpop.f32.mrb[13].mxu1  ;;  %v1121_v62 = vmul.f32 %v1833_v56, %v1833_v56  ;;  %v1100_v1 = vsel %vm214_vm1, %v1833_v56, 0.0 }
 0x8c8   :  { %v1837_v63 = vmax.f32 %v1065_v59, 0.0  ;;  %v1128_v11 = vsel %vm214_vm1, %v1121_v62, 0.0 }
 0x8c9   :  { %v1069_v0 = vpop.f32.mrb[14].mxu1 }
 0x8ca   :  { %v1101_v58 = vsel %vm214_vm1, %v1837_v63, 0.0  ;;  %v1122_v3 = vmul.f32 %v1837_v63, %v1837_v63  ;;  %v1070_v4 = vadd.f32 %v1069_v0, %v970_v52  ;;  %v1438_v6 = vpop.f32.mrb[15].mxu1 }
 0x8cb   :  { %v1102_v8 = vadd.f32 %v1101_v58, %v1100_v1 }
 0x8cc   :  { %v1129_v12 = vsel %vm214_vm1, %v1122_v3, 0.0  ;;  %v1847_v13 = vmax.f32 %v1070_v4, 0.0 }
 0x8cd   :  { %v1130_v14 = vadd.f32 %v1129_v12, %v1128_v11  ;;  %v1074_v15 = vpop.f32.mrb[16].mxu1 }
 0x8ce   :  { %v1103_v16 = vsel %vm214_vm1, %v1847_v13, 0.0  ;;  %v1123_v17 = vmul.f32 %v1847_v13, %v1847_v13  ;;  %v1075_v25 = vadd.f32 %v1074_v15, %v970_v52  ;;  %v1441_v18 = vpop.f32.mrb[17].mxu1 }
 0x8cf   :  { %v1104_v5 = vadd.f32 %v1103_v16, %v1102_v8 }
 0x8d0   :  { %v1131_v19 = vsel %vm214_vm1, %v1123_v17, 0.0  ;;  %v1096_v9 = vmax.f32 %v1075_v25, 0.0 }
 0x8d1   :  { %v1132_v24 = vadd.f32 %v1131_v19, %v1130_v14  ;;  %v1079_v20 = vpop.f32.mrb[18].mxu1 }
 0x8d2   :  { %v1105_v7 = vsel %vm214_vm1, %v1096_v9, 0.0  ;;  %v1124_v21 = vmul.f32 %v1096_v9, %v1096_v9  ;;  %v1080_v22 = vadd.f32 %v1079_v20, %v970_v52  ;;  %v1444_v26 = vpop.f32.mrb[19].mxu1 }
 0x8d3   :  { %v1106_v28 = vadd.f32 %v1105_v7, %v1104_v5 }
 0x8d4   :  { %v1133_v29 = vsel %vm214_vm1, %v1124_v21, 0.0  ;;  %v1097_v31 = vmax.f32 %v1080_v22, 0.0 }
 0x8d5   :  { %v1134_v32 = vadd.f32 %v1133_v29, %v1132_v24  ;;  %v1084_v33 = vpop.f32.mrb[20].mxu1 }
 0x8d6   :  { %v1107_v34 = vsel %vm214_vm1, %v1097_v31, 0.0  ;;  %v1125_v35 = vmul.f32 %v1097_v31, %v1097_v31  ;;  %v1085_v36 = vadd.f32 %v1084_v33, %v970_v52  ;;  %v1447_v37 = vpop.f32.mrb[21].mxu1  ;;  %v1183_v33 = vrot.slane %v1765_v10, %v464_v61 }
 0x8d7   :  { %v1108_v38 = vadd.f32 %v1107_v34, %v1106_v28 }
 0x8d8   :  { %v1135_v39 = vsel %vm214_vm1, %v1125_v35, 0.0  ;;  %v1098_v40 = vmax.f32 %v1085_v36, 0.0 }
 0x8d9   :  { %v1136_v41 = vadd.f32 %v1135_v39, %v1134_v32  ;;  %v1089_v42 = vpop.f32.mrb[22].mxu1 }
 0x8da   :  { %v1109_v43 = vsel %vm214_vm1, %v1098_v40, 0.0  ;;  %v1126_v44 = vmul.f32 %v1098_v40, %v1098_v40  ;;  %v1090_v45 = vadd.f32 %v1089_v42, %v970_v52  ;;  %v1450_v46 = vpop.f32.mrb[23].mxu1 }
 0x8db   :  { %v1110_v47 = vadd.f32 %v1109_v43, %v1108_v38 }
 0x8dc   :  { %v1137_v48 = vsel %vm214_vm1, %v1126_v44, 0.0  ;;  %v1099_v49 = vmax.f32 %v1090_v45, 0.0 }
 0x8dd   :  { %v1138_v50 = vadd.f32 %v1137_v48, %v1136_v41  ;;  %v1215_v48 = vrot.slane %v1765_v10, %v565_v30 }
 0x8de   :  { %v1111_v51 = vsel %vm214_vm1, %v1099_v49, 0.0  ;;  %v1127_v53 = vmul.f32 %v1099_v49, %v1099_v49 }
 0x8df   :  { %v1112_v54 = vadd.f32 %v1111_v51, %v1110_v47 }
 0x8e0   :  { %v1139_v55 = vsel %vm214_vm1, %v1127_v53, 0.0 }
 0x8e1   :  { %v1113_v57 = vrot.slane %v1112_v54, 4  ;;  %v1140_v59 = vadd.f32 %v1139_v55, %v1138_v50 }
 0x8e3   :  { %v1114_v60 = vadd.f32 %v1113_v57, %v1112_v54  ;;  %v1141_v62 = vrot.slane %v1140_v59, 4 }
 0x8e5   :  { %v1115_v0 = vrot.slane %v1114_v60, 2  ;;  %v1142_v1 = vadd.f32 %v1141_v62, %v1140_v59 }
 0x8e7   :  { %v1116_v58 = vadd.f32 %v1115_v0, %v1114_v60  ;;  %v1143_v52 = vrot.slane %v1142_v1, 2 }
 0x8e9   :  { %v1117_v3 = vrot.slane %v1116_v58, 1  ;;  %v1144_v4 = vadd.f32 %v1143_v52, %v1142_v1 }
 0x8eb   :  { %v1118_v6 = vadd.f32 %v1117_v3, %v1116_v58  ;;  %v1145_v8 = vrot.slane %v1144_v4, 1 }
 0x8ed   :  { %v1120_v11 = vmul.f32 0.017857144, %v1118_v6  ;;  %v1146_v12 = vadd.f32 %v1145_v8, %v1144_v4 }
 0x8ef   :  { %v1147_v14 = vmul.f32 0.017857144, %v1146_v12  ;;  %v1148_v15 = vmul.f32 %v1120_v11, %v1120_v11 }
 0x8f1   :  { %v1149_v16 = vsub.f32 %v1147_v14, %v1148_v15 }
 0x8f3   :  { %v1150_v17 = vadd.f32 1e-05, %v1149_v16 }
 0x8f5   :  { %1535 = vrsqrt.f32 %v1150_v17 }
 0x8ff   :  { %v1536_v25 = vpop.eup %1535 }
 0x900   :  { %v1152_v18 = vmul.f32 %v1536_v25, %v1765_v10 }
 0x902   :  { %v1153_v5 = vmul.f32 %v1152_v18, %v1120_v11  ;;  %v1161_v19 = vrot.slane %v1152_v18, %v256_v2 }
 0x904   :  { %v1155_v24 = vrot.slane %v1153_v5, 7  ;;  %v1168_v20 = vmul.f32 %v1161_v19, %v1099_v49  ;;  %v1164_v7 = vmul.f32 %v1161_v19, %v1847_v13  ;;  %v1162_v21 = vmul.f32 %v1161_v19, %v1833_v56 }
 0x905   :  { %v1163_v22 = vmul.f32 %v1161_v19, %v1837_v63  ;;  %v1165_v26 = vmul.f32 %v1161_v19, %v1096_v9  ;;  %v1166_v28 = vmul.f32 %v1161_v19, %v1097_v31  ;;  %v1167_v29 = vmul.f32 %v1161_v19, %v1098_v40 }
 0x906   :  { %v1157_v32 = vsub.f32 %v1765_v10, %v1155_v24 }
 0x908   :  { %v1172_v2 = vrot.slane %v1157_v32, %v351_v27 }
 0x90a   :  { %v1175_v34 = vadd.f32 %v1172_v2, %v1164_v7  ;;  %v1173_v35 = vadd.f32 %v1172_v2, %v1162_v21  ;;  %v1174_v36 = vadd.f32 %v1172_v2, %v1163_v22  ;;  %v1176_v13 = vadd.f32 %v1172_v2, %v1165_v26 }
 0x90b   :  { %v1177_v37 = vadd.f32 %v1172_v2, %v1166_v28  ;;  %v1178_v56 = vadd.f32 %v1172_v2, %v1167_v29  ;;  %v1179_v38 = vadd.f32 %v1172_v2, %v1168_v20 }
 0x90c   :  { %v1186_v63 = vmul.f32 %v1183_v33, %v1175_v34  ;;  %v1184_v9 = vmul.f32 %v1183_v33, %v1173_v35  ;;  %v1185_v40 = vmul.f32 %v1183_v33, %v1174_v36  ;;  %v1187_v41 = vmul.f32 %v1183_v33, %v1176_v13 }
 0x90d   :  { %v1188_v42 = vmul.f32 %v1183_v33, %v1177_v37  ;;  %v1189_v44 = vmul.f32 %v1183_v33, %v1178_v56  ;;  %v1190_v46 = vmul.f32 %v1183_v33, %v1179_v38 }
 0x90e   :  { %v1197_v31 = vsel %vm214_vm1, %v1186_v63, 0.0  ;;  %v1191_v39 = vsel %vm214_vm1, %v1184_v9, 0.0  ;;  %v1194_v61 = vsel %vm214_vm1, %v1185_v40, 0.0  ;;  %v1200_v27 = vsel %vm214_vm1, %v1187_v41, 0.0 }
 0x90f   :  { %1198 = vadd.xlane.f32.xlu0 %v1197_v31  ;;  %1192 = vadd.xlane.f32.xlu1 %v1191_v39  ;;  %v1203_v43 = vsel %vm214_vm1, %v1188_v42, 0.0  ;;  %v1206_v45 = vsel %vm214_vm1, %v1189_v44, 0.0  ;;  %v1209_v47 = vsel %vm214_vm1, %v1190_v46, 0.0 }
 0x913   :  { %1195 = vadd.xlane.f32.xlu1 %v1194_v61 }
 0x917   :  { %1201 = vadd.xlane.f32.xlu1 %v1200_v27 }
 0x91b   :  { %1204 = vadd.xlane.f32.xlu1 %v1203_v43 }
 0x91f   :  { %1207 = vadd.xlane.f32.xlu1 %v1206_v45 }
 0x923   :  { %1210 = vadd.xlane.f32.xlu1 %v1209_v47 }
 0x99c   :  { %v1199_v49 = vpop.xlane.xlu0 %1198  ;;  %v1193_v50 = vpop.xlane.xlu1 %1192 }
 0x99d   :  { %v1218_v51 = vadd.f32 %v1215_v48, %v1199_v49  ;;  %v1216_v53 = vadd.f32 %v1215_v48, %v1193_v50 }
 0x99f   :  { %1226 = vst.msk [vmem:[%s1923_s11 + $0x10] sm:$0xff] %vm1223_vm5, %v1218_v51  ;;  %1224 = vst.msk [vmem:[%s1923_s11] sm:$0xff] %vm1223_vm5, %v1216_v53 }
 0x9a0   :  { %v1196_v54 = vpop.xlane.xlu1 %1195 }
 0x9a1   :  { %v1217_v55 = vadd.f32 %v1215_v48, %v1196_v54 }
 0x9a3   :  { %1225 = vst.msk [vmem:[%s1923_s11 + $0x8] sm:$0xff] %vm1223_vm5, %v1217_v55 }
 0x9a4   :  { %v1202_v23 = vpop.xlane.xlu1 %1201 }
 0x9a5   :  { %v1219_v30 = vadd.f32 %v1215_v48, %v1202_v23 }
 0x9a7   :  { %1227 = vst.msk [vmem:[%s1923_s11 + $0x18] sm:$0xff] %vm1223_vm5, %v1219_v30 }
 0x9a8   :  { %v1205_v10 = vpop.xlane.xlu1 %1204 }
 0x9a9   :  { %v1220_v57 = vadd.f32 %v1215_v48, %v1205_v10 }
 0x9ab   :  { %1228 = vst.msk [vmem:[%s1923_s11 + $0x20] sm:$0xff] %vm1223_vm5, %v1220_v57 }
 0x9ac   :  { %v1208_v59 = vpop.xlane.xlu1 %1207 }
 0x9ad   :  { %v1221_v60 = vadd.f32 %v1215_v48, %v1208_v59 }
 0x9af   :  { %1229 = vst.msk [vmem:[%s1923_s11 + $0x28] sm:$0xff] %vm1223_vm5, %v1221_v60 }
 0x9b0   :  { %v1211_v62 = vpop.xlane.xlu1 %1210 }
 0x9b1   :  { %v1222_v0 = vadd.f32 %v1215_v48, %v1211_v62 }
 0x9b3   :  { %1230 = vst.msk [vmem:[%s1923_s11 + $0x30] sm:$0xff] %vm1223_vm5, %v1222_v0 }

</bundles_post_ra>
